<compile_context>
chip_gen: v5e
topology: v5e:2x2
jax: 0.10.0
libtpu: 0.0.40
codegen_flags: <defaults>
</compile_context>

<pallas_src>
import functools

import numpy as np
import jax
import jax.numpy as jnp
from jax.experimental import pallas as pl
from jax.experimental.pallas import tpu as pltpu


def _cdiv(a, b):
    return -(-a // b)


def _round_up(a, b):
    return _cdiv(a, b) * b


# ----------------------------- window filters -------------------------------

def hanning_window(K):
    grid = np.arange(K, dtype=np.float32) / K
    h = np.sin(grid * np.pi) ** 2
    return np.outer(h, h).astype(np.float32)


def gaussian_window(K):
    grid = np.arange(K, dtype=np.float32) / K
    g = np.exp(-18.0 * (grid - 0.5) ** 2)
    return np.outer(g, g).astype(np.float32)


def _window_filter(K, window):
    if window == 'hanning':
        return hanning_window(K)
    if window == 'gaussian':
        return gaussian_window(K)
    return np.ones((K, K), dtype=np.float32)


# ---------- window-folded, patch-packed, fused re|im DFT weight -------------

def make_packed_dft_matrix(K, window_filter, pack):
    """Block-diagonal weight of shape (pack*K2, 2*pack*K2).

    Input row index c = j*K2 + (a*K + b): position (a, b) of the j-th packed
    patch.  Output cols [0, pack*K2) are the real parts, [pack*K2, 2*pack*K2)
    the imaginary parts; within each half, block j, column r = m*K + n is the
    output frequency:

        F_j[m, n] = sum_{a,b} win[a,b] * x_j[a,b] * exp(-2*pi*i*(m*a+n*b)/K)
    """
    K2 = K * K
    m = np.arange(K).reshape(K, 1, 1, 1)
    n = np.arange(K).reshape(1, K, 1, 1)
    a = np.arange(K).reshape(1, 1, K, 1)
    b = np.arange(K).reshape(1, 1, 1, K)
    ang = 2.0 * np.pi * (m * a + n * b) / K                      # (K, K, K, K)
    w = window_filter.reshape(1, 1, K, K)
    m_real_t = (np.cos(ang) * w).reshape(K2, K2).T               # (pos, freq)
    m_imag_t = (-np.sin(ang) * w).reshape(K2, K2).T              # (pos, freq)

    W = np.zeros((pack * K2, 2 * pack * K2), dtype=np.float32)
    for j in range(pack):
        r0 = j * K2
        W[r0:r0 + K2, r0:r0 + K2] = m_real_t
        W[r0:r0 + K2, pack * K2 + r0:pack * K2 + r0 + K2] = m_imag_t
    return W


# ------------------------------- Pallas kernel -------------------------------

def _stft_dft_kernel(p_ref, w_ref, o_ref):
    # p_ref: (tile_rows, pack*K2) packed patches
    # w_ref: (pack*K2, 2*pack*K2) block-diagonal window-folded DFT weight
    # o_ref: (tile_rows, 2*pack*K2) -> [re | im] per packed patch, lane-dense
    o_ref[...] = jnp.dot(
        p_ref[...], w_ref[...],
        precision=jax.lax.Precision.HIGHEST,
        preferred_element_type=jnp.float32,
    )


def packed_dft_pallas(packed, W, max_tile_rows=2048):
    n_rows, w_in = packed.shape
    w_out = W.shape[1]

    # Large tiles amortize per-step overhead; keep >= 2 grid steps so both
    # TensorCores (v7x / megacore) get work; tiles are sublane (8) multiples.
    tile_rows = max(8, min(_round_up(max_tile_rows, 8),
                           _round_up(_cdiv(n_rows, 2), 8)))
    grid = (_cdiv(n_rows, tile_rows),)

    # VMEM budget: double-buffered input + output tiles + weights + margin.
    vmem_budget = 4 * (2 * tile_rows * (w_in + w_out) + 2 * w_in * w_out) + (4 << 20)
    vmem_limit = int(min(max(vmem_budget, 32 << 20), 48 << 20))

    return pl.pallas_call(
        _stft_dft_kernel,
        out_shape=jax.ShapeDtypeStruct((n_rows, w_out), jnp.float32),
        grid=grid,
        in_specs=[
            pl.BlockSpec((tile_rows, w_in), lambda i: (i, 0)),
            pl.BlockSpec((w_in, w_out), lambda i: (0, 0)),
        ],
        out_specs=pl.BlockSpec((tile_rows, w_out), lambda i: (i, 0)),
        compiler_params=pltpu.CompilerParams(
            dimension_semantics=("parallel",),
            vmem_limit_bytes=vmem_limit,
        ),
    )(packed, W)


# ------------------------------ JAX glue ------------------------------------

def _extract_patches(x, K, stride):
    """(B, C, H, W) -> (B, C, Ph, Pw, K, K), matching F.unfold ordering."""
    B, C, H, W = x.shape
    Ph = (H - K) // stride + 1
    Pw = (W - K) // stride + 1
    if stride == K and H % K == 0 and W % K == 0:
        # Non-overlapping patches: pure reshape, no gather.
        p = x.reshape(B, C, Ph, K, Pw, K)
        return jnp.transpose(p, (0, 1, 2, 4, 3, 5))
    kk = jnp.arange(K)
    rows = jnp.arange(Ph)[:, None] * stride + kk[None, :]        # (Ph, K)
    cols = jnp.arange(Pw)[:, None] * stride + kk[None, :]        # (Pw, K)
    xr = x[:, :, rows, :]                                        # (B, C, Ph, K, W)
    p = xr[:, :, :, :, cols]                                     # (B, C, Ph, K, Pw, K)
    return jnp.transpose(p, (0, 1, 2, 4, 3, 5))


def stft_forward(x, K, window, stride, complex_out=False,
                 max_tile_rows=2048, lane_target=128):
    assert window in ('hanning', 'gaussian', 'rectangle')
    win = _window_filter(K, window)
    if window in ('hanning', 'gaussian'):
        pad = K // 2
        x = jnp.pad(x, ((0, 0), (0, 0), (pad, pad), (pad, pad)), mode='reflect')

    patches = _extract_patches(x, K, stride)                     # (B,C,Ph,Pw,K,K)
    B, C, Ph, Pw = patches.shape[:4]
    assert Ph == Pw, "module assumes a square grid of patches (sqrt(L) int)"
    K2 = K * K
    N = B * C * Ph * Pw

    # Pack `pack` patches per row so input (128) and output (256) lanes are
    # dense.  (Use lane_target=256 on v6e/v7x to fill the 256-wide MXU.)
    pack = max(1, lane_target // K2)
    n_rows = _cdiv(N, pack)
    n_pad = n_rows * pack - N

    pf = patches.reshape(N, K2).astype(jnp.float32)
    if n_pad:
        pf = jnp.pad(pf, ((0, n_pad), (0, 0)))
    packed = pf.reshape(n_rows, pack * K2)

    W = jnp.asarray(make_packed_dft_matrix(K, win, pack))
    out = packed_dft_pallas(packed, W, max_tile_rows)            # (n_rows, 2*pack*K2)

    re = out[:, :pack * K2].reshape(n_rows * pack, K2)[:N].reshape(B, C, Ph, Pw, K2)
    im = out[:, pack * K2:].reshape(n_rows * pack, K2)[:N].reshape(B, C, Ph, Pw, K2)

    if complex_out:
        out_c = (re + 1j * im).transpose(0, 1, 4, 2, 3)          # (B,C,K2,Ph,Pw)
        return out_c.reshape(B, C * K2, Ph, Pw)

    # [re[0], re[1:], im[1:]] per channel (matches torch view_as_real layout).
    full = jnp.concatenate([re, im[..., 1:]], axis=-1)           # (B,C,Ph,Pw,2*K2-1)
    # TODO(synk): the final freq-major permute is still one wrapper-side HBM
    # pass; folding it into the kernel would need an in-kernel transpose of
    # the packed layout (not worth the XLU shuffles here).
    out_r = jnp.transpose(full, (0, 1, 4, 2, 3))                 # (B,C,2*K2-1,Ph,Pw)
    return out_r.reshape(B, C * (2 * K2 - 1), Ph, Pw)


# ------------------------- NumPy reference (host) ----------------------------

def _np_extract_patches(x, K, stride):
    B, C, H, W = x.shape
    Ph = (H - K) // stride + 1
    Pw = (W - K) // stride + 1
    out = np.empty((B, C, Ph, Pw, K, K), dtype=x.dtype)
    for i in range(Ph):
        for j in range(Pw):
            out[:, :, i, j] = x[:, :, i * stride:i * stride + K,
                                j * stride:j * stride + K]
    return out


def stft_reference_np(x_np, K, window, stride, complex_out=False):
    win = _window_filter(K, window).astype(np.float64)
    if window in ('hanning', 'gaussian'):
        pad = K // 2
        x_np = np.pad(x_np, ((0, 0), (0, 0), (pad, pad), (pad, pad)), mode='reflect')
    p = _np_extract_patches(x_np.astype(np.float64), K, stride) * win
    F2 = np.fft.fft2(p, axes=(-2, -1))
    B, C, Ph, Pw = p.shape[:4]
    K2 = K * K
    F2 = F2.reshape(B, C, Ph, Pw, K2).transpose(0, 1, 4, 2, 3)   # (B,C,K2,Ph,Pw)
    if complex_out:
        return F2.reshape(B, C * K2, Ph, Pw)
    out = np.concatenate([F2.real, F2.imag[:, :, 1:]], axis=2)
    return out.reshape(B, C * (2 * K2 - 1), Ph, Pw).astype(np.float32)


# ----------------------------------- main ------------------------------------

if __name__ == "__main__":
    B, C, H, W = 2, 4, 16, 16
    K, stride = 4, 4
    window = 'hanning'

    key = jax.random.PRNGKey(0)
    x = jax.random.normal(key, (B, C, H, W), dtype=jnp.float32)

    fwd = jax.jit(functools.partial(stft_forward, K=K, window=window,
                                    stride=stride, complex_out=False))
    out = jax.block_until_ready(fwd(x))

    ref = stft_reference_np(np.asarray(x), K, window, stride, complex_out=False)

    assert out.shape == ref.shape == (B, C * (2 * K * K - 1), 5, 5), (out.shape, ref.shape)
    np.testing.assert_allclose(np.asarray(out), ref, rtol=2e-3, atol=2e-3)

    print("KERNEL_OK")
</pallas_src>

<mosaic_0001>
module attributes {stable_mosaic.version = 11 : i64} {
  func.func @_stft_dft_kernel(%arg0: i32, %arg1: memref<16x128xf32, #tpu.memory_space<vmem>>, %arg2: memref<128x256xf32, #tpu.memory_space<vmem>>, %arg3: memref<16x256xf32, #tpu.memory_space<vmem>>) attributes {dimension_semantics = [#tpu.dimension_semantics<parallel>], iteration_bounds = array<i64: 2>, scalar_prefetch = 0 : i64, scratch_operands = 0 : i64, tpu.core_type = #tpu.core_type<tc>, window_params = [{transform_indices = @transform_0, window_bounds = array<i64: 16, 128>}, {pipeline_mode = #tpu.pipeline_mode<synchronous>, transform_indices = @transform_1, window_bounds = array<i64: 128, 256>}, {transform_indices = @transform_2, window_bounds = array<i64: 16, 256>}]} {
    %c0 = arith.constant 0 : index
    %c0_0 = arith.constant 0 : index
    %0 = vector.load %arg1[%c0, %c0_0] : memref<16x128xf32, #tpu.memory_space<vmem>>, vector<16x128xf32>
    %c0_1 = arith.constant 0 : index
    %c0_2 = arith.constant 0 : index
    %1 = vector.load %arg2[%c0_1, %c0_2] : memref<128x256xf32, #tpu.memory_space<vmem>>, vector<128x256xf32>
    %cst = arith.constant dense<0.000000e+00> : vector<16x256xf32>
    %2 = tpu.matmul %0, %1, %cst {dimension_numbers = #tpu.dot_dimension_numbers<[1], [0], [0], [1], [0, 0, 1, 1], [], []>, precision = #tpu.contract_precision<fp32>} : vector<16x128xf32>, vector<128x256xf32>, vector<16x256xf32> -> vector<16x256xf32>
    %c0_3 = arith.constant 0 : index
    %c0_4 = arith.constant 0 : index
    %3 = vector.load %arg3[%c0_3, %c0_4] : memref<16x256xf32, #tpu.memory_space<vmem>>, vector<16x256xf32>
    tpu.vector_store %arg3[%c0_3, %c0_4], %2 {strides = array<i32>} : memref<16x256xf32, #tpu.memory_space<vmem>>, vector<16x256xf32>,
    return
  }
  func.func @transform_0(%arg0: i32) -> (i32, i32) {
    %c0_i32 = arith.constant 0 : i32
    %c0_i32_0 = arith.constant 0 : i32
    return %arg0, %c0_i32 : i32, i32
  }
  func.func @transform_1(%arg0: i32) -> (i32, i32) {
    %c0_i32 = arith.constant 0 : i32
    %c0_i32_0 = arith.constant 0 : i32
    %c0_i32_1 = arith.constant 0 : i32
    return %c0_i32, %c0_i32_0 : i32, i32
  }
  func.func @transform_2(%arg0: i32) -> (i32, i32) {
    %c0_i32 = arith.constant 0 : i32
    %c0_i32_0 = arith.constant 0 : i32
    return %arg0, %c0_i32 : i32, i32
  }
}

</mosaic_0001>

<bundles_post_ra>
// kernel: stft_forward.1
= control target key start
LH: loop header
LB: loop body
LE: loop exit
PB: predicated region body
PF: predicated region fallthrough
CT: control target
= control target key end

     0   :  { %s1033_s9 = smov 0   ;;  %s1696_s0 = inlined_call_operand.vmem [shape: f32[25,128], index: 0, kind: input, shape index: {}]   ;;  %s1697_s1 = inlined_call_operand.vmem [shape: f32[128,256], index: 1, kind: input, shape index: {}]   ;;  %s1698_s2 = inlined_call_operand.vmem [shape: f32[25,256], index: 2, kind: output, shape index: {}]  }
   0x1 LB: > { %s989_s10 = sadd.s32 4294967295, %s1016_s9   ;;  %p993_p0 = scmp.ge.s32.totalorder %s1016_s9, 1  ;;  %s1016_s9 = sphi %s1033_s9, %s12_s9  }
   0x2   : > { %p113_p1 = scmp.lt.s32.totalorder %s1016_s9, 3 }
   0x4   : > { %p114_p2 = pnand %p993_p0, %p113_p1 }
   0x6   : > { %117 = sbr.rel (%p114_p2) target bundleno = 265 (0x109), region = 28 }
   0xb   : > { %v181_v0 = vld [vmem:[%s1697_s1 + $0xf0] sm:$0xff]  ;;  %v179_v1 = vld [vmem:[%s1697_s1 + $0xe0] sm:$0xff]  ;;  %v182_v59 = vld [vmem:[%s1697_s1 + $0xf8] sm:$0xff]  ;;  %s1230_s21 = sshll.u32 %s989_s10, 1 }
   0xc   : > { %v177_v2 = vld [vmem:[%s1697_s1 + $0xd0] sm:$0xff]  ;;  %v1050_v3 = vand.u32 4294901760, %v181_v0  ;;  %v1052_v4 = vand.u32 4294901760, %v179_v1  ;;  %v175_v6 = vld [vmem:[%s1697_s1 + $0xc0] sm:$0xff]  ;;  %p137_p3 = scmp.lt.s32.totalorder %s1230_s21, 3 }
   0xd   : > { %v1054_v5 = vand.u32 4294901760, %v177_v2  ;;  %v173_v7 = vld [vmem:[%s1697_s1 + $0xb0] sm:$0xff]  ;;  %v171_v8 = vld [vmem:[%s1697_s1 + $0xa0] sm:$0xff]  ;;  %v1065_v9 = vand.u32 4294901760, %v175_v6 }
   0xe   : > { %v1067_v10 = vand.u32 4294901760, %v173_v7  ;;  %v1069_v11 = vand.u32 4294901760, %v171_v8  ;;  %v169_v12 = vld [vmem:[%s1697_s1 + $0x90] sm:$0xff]  ;;  %v167_v13 = vld [vmem:[%s1697_s1 + $0x80] sm:$0xff]  ;;  %184 = vmatpush.msra.mxu0 %v1050_v3  ;;  %v1079_v14 = vsub.f32 %v181_v0, %v1050_v3  ;;  %v1082_v15 = vsub.f32 %v179_v1, %v1052_v4  ;;  %397 = vmatpush.msra.mxu3 %v1050_v3  ;;  %s1755_s21 = smov (!%p137_p3, %s1230_s21), 3 }
   0xf   : > { %v1086_v16 = vsub.f32 %v177_v2, %v1054_v5  ;;  %v1088_v17 = vand.u32 4294901760, %v169_v12  ;;  %v165_v18 = vld [vmem:[%s1697_s1 + $0x70] sm:$0xff]  ;;  %v1094_v19 = vsub.f32 %v175_v6, %v1065_v9  ;;  %v1107_v25 = vand.u32 4294901760, %v167_v13  ;;  %v163_v26 = vld [vmem:[%s1697_s1 + $0x60] sm:$0xff]  ;;  %v180_v6 = vld [vmem:[%s1697_s1 + $0xe8] sm:$0xff]  ;;  %s995_s5 = sshll.u32 %s1755_s21, 3 }
  0x10   : > { %v1097_v20 = vsub.f32 %v173_v7, %v1067_v10  ;;  %v1100_v21 = vsub.f32 %v171_v8, %v1069_v11  ;;  %186 = vmatpush.msra.mxu0 %v1052_v4  ;;  %339 = vmatpush.msra.mxu2 %v1079_v14  ;;  %v234_v22 = vand.u32 4294901760, %v1079_v14  ;;  %v1715_v23 = vand.u32 4294901760, %v1082_v15  ;;  %v161_v36 = vld [vmem:[%s1697_s1 + $0x50] sm:$0xff]  ;;  %v159_v42 = vld [vmem:[%s1697_s1 + $0x40] sm:$0xff]  ;;  %s1366_s14 = scalar_lea.vmem %s1696_s0, %s995_s5  ;;  %s1001_s27 = sshll.u32 %s1755_s21, 4 }
  0x11   : > { %v1712_v24 = vand.u32 4294901760, %v1086_v16  ;;  %399 = vmatpush.msra.mxu3 %v1052_v4  ;;  %v1711_v27 = vand.u32 4294901760, %v1094_v19  ;;  %v1114_v28 = vand.u32 4294901760, %v165_v18  ;;  %v1117_v29 = vsub.f32 %v169_v12, %v1088_v17  ;;  %v157_v48 = vld [vmem:[%s1697_s1 + $0x30] sm:$0xff]  ;;  %v155_v54 = vld [vmem:[%s1697_s1 + $0x20] sm:$0xff]  ;;  %s1687_s30 = scalar_lea.vmem %s1698_s2, %s1001_s27 }
  0x12   : > { %188 = vmatpush.msra.mxu0 %v1054_v5  ;;  %342 = vmatpush.msra.mxu2 %v1082_v15  ;;  %v235_v30 = vsub.f32 %v1079_v14, %v234_v22  ;;  %v241_v31 = vsub.f32 %v1082_v15, %v1715_v23  ;;  %v1708_v33 = vand.u32 4294901760, %v1097_v20  ;;  %v1132_v34 = vand.u32 4294901760, %v163_v26  ;;  %v153_v61 = vld [vmem:[%s1697_s1 + $0x10] sm:$0xff]  ;;  %v151_v2 = vld [vmem:[%s1697_s1] sm:$0xff] }
  0x13   : > { %v247_v32 = vsub.f32 %v1086_v16, %v1712_v24  ;;  %401 = vmatpush.msra.mxu3 %v1054_v5  ;;  %v1707_v35 = vand.u32 4294901760, %v1100_v21  ;;  %v253_v39 = vsub.f32 %v1094_v19, %v1711_v27  ;;  %v1144_v40 = vsub.f32 %v167_v13, %v1107_v25 }
  0x14   : > { %190 = vmatpush.msra.mxu0 %v1065_v9  ;;  %v236_v37 = vand.u32 4294901760, %v235_v30  ;;  %345 = vmatpush.msra.mxu2 %v1086_v16  ;;  %v242_v38 = vand.u32 4294901760, %v241_v31  ;;  %v1148_v41 = vsub.f32 %v165_v18, %v1114_v28  ;;  %v259_v44 = vsub.f32 %v1097_v20, %v1708_v33 }
  0x15   : > { %403 = vmatpush.msra.mxu3 %v1065_v9  ;;  %v248_v43 = vand.u32 4294901760, %v247_v32  ;;  %v1157_v45 = vand.u32 4294901760, %v161_v36  ;;  %v1705_v46 = vand.u32 4294901760, %v1117_v29  ;;  %v265_v47 = vsub.f32 %v1100_v21, %v1707_v35  ;;  %v178_v32 = vld [vmem:[%s1697_s1 + $0xd8] sm:$0xff] }
  0x16   : > { %192 = vmatpush.msra.mxu0 %v1067_v10  ;;  %237 = vmatpush.msra.mxu1 %v236_v37  ;;  %v254_v49 = vand.u32 4294901760, %v253_v39  ;;  %v1169_v50 = vand.u32 4294901760, %v159_v42  ;;  %v1704_v51 = vand.u32 4294901760, %v1144_v40  ;;  %v1173_v52 = vsub.f32 %v163_v26, %v1132_v34 }
  0x17   : > { %348 = vmatpush.msra.mxu2 %v1094_v19  ;;  %405 = vmatpush.msra.mxu3 %v1067_v10  ;;  %v1702_v53 = vand.u32 4294901760, %v1148_v41  ;;  %v260_v55 = vand.u32 4294901760, %v259_v44  ;;  %v271_v56 = vsub.f32 %v1117_v29, %v1705_v46  ;;  %v1185_v57 = vand.u32 4294901760, %v157_v48  ;;  %v176_v44 = vld [vmem:[%s1697_s1 + $0xc8] sm:$0xff] }
  0x18   : > { %194 = vmatpush.msra.mxu0 %v1069_v11  ;;  %243 = vmatpush.msra.mxu1 %v242_v38  ;;  %v1188_v58 = vsub.f32 %v161_v36, %v1157_v45  ;;  %v266_v60 = vand.u32 4294901760, %v265_v47  ;;  %v277_v62 = vsub.f32 %v1144_v40, %v1704_v51  ;;  %v1202_v63 = vand.u32 4294901760, %v155_v54 }
  0x19   : > { %351 = vmatpush.msra.mxu2 %v1097_v20  ;;  %407 = vmatpush.msra.mxu3 %v1069_v11  ;;  %v1701_v0 = vand.u32 4294901760, %v1173_v52  ;;  %v1206_v1 = vsub.f32 %v159_v42, %v1169_v50  ;;  %v283_v7 = vsub.f32 %v1148_v41, %v1702_v53  ;;  %v1219_v8 = vand.u32 4294901760, %v182_v59 }
  0x1a   : > { %196 = vmatpush.msra.mxu0 %v1088_v17  ;;  %249 = vmatpush.msra.mxu1 %v248_v43  ;;  %v272_v12 = vand.u32 4294901760, %v271_v56  ;;  %v1222_v13 = vand.u32 4294901760, %v153_v61  ;;  %v1700_v18 = vand.u32 4294901760, %v1188_v58  ;;  %v1226_v26 = vsub.f32 %v157_v48, %v1185_v57 }
  0x1b   : > { %354 = vmatpush.msra.mxu2 %v1100_v21  ;;  %409 = vmatpush.msra.mxu3 %v1088_v17  ;;  %v1234_v30 = vand.u32 4294901760, %v151_v2  ;;  %v1236_v31 = vand.u32 4294901760, %v180_v6  ;;  %v278_v36 = vand.u32 4294901760, %v277_v62  ;;  %v289_v37 = vsub.f32 %v1173_v52, %v1701_v0 }
  0x1c   : > { %198 = vmatpush.msra.mxu0 %v1107_v25  ;;  %255 = vmatpush.msra.mxu1 %v254_v49  ;;  %v1699_v38 = vand.u32 4294901760, %v1206_v1  ;;  %v1247_v39 = vsub.f32 %v155_v54, %v1202_v63  ;;  %v284_v42 = vand.u32 4294901760, %v283_v7  ;;  %v1252_v43 = vsub.f32 %v182_v59, %v1219_v8 }
  0x1d   : > { %357 = vmatpush.msra.mxu2 %v1117_v29  ;;  %411 = vmatpush.msra.mxu3 %v1107_v25  ;;  %1723 = vst [vmem:[#allocation2_spill] sm:$0xff] %v1234_v30  ;;  %v295_v47 = vsub.f32 %v1188_v58, %v1700_v18  ;;  %v1703_v48 = vand.u32 4294901760, %v1226_v26  ;;  %v1264_v49 = vsub.f32 %v153_v61, %v1222_v13  ;;  %v1266_v54 = vand.u32 4294901760, %v178_v32 }
  0x1e   : > { %200 = vmatpush.msra.mxu0 %v1114_v28  ;;  %261 = vmatpush.msra.mxu1 %v260_v55  ;;  %v174_v55 = vld [vmem:[%s1697_s1 + $0xb8] sm:$0xff]  ;;  %v1274_v56 = vsub.f32 %v151_v2, %v1234_v30  ;;  %v1277_v59 = vsub.f32 %v180_v6, %v1236_v31  ;;  %v301_v61 = vsub.f32 %v1206_v1, %v1699_v38  ;;  %v1706_v62 = vand.u32 4294901760, %v1247_v39 }
  0x1f   : > { %360 = vmatpush.msra.mxu2 %v1144_v40  ;;  %413 = vmatpush.msra.mxu3 %v1114_v28  ;;  %v1284_v7 = vand.u32 4294901760, %v176_v44  ;;  %v1709_v2 = vand.u32 4294901760, %v1252_v43  ;;  %v1289_v6 = vand.u32 4294901760, %v174_v55  ;;  %v1710_v38 = vand.u32 4294901760, %v1264_v49 }
  0x20   : > { %202 = vmatpush.msra.mxu0 %v1132_v34  ;;  %267 = vmatpush.msra.mxu1 %v266_v60  ;;  %v290_v60 = vand.u32 4294901760, %v289_v37  ;;  %v307_v37 = vsub.f32 %v1226_v26, %v1703_v48  ;;  %v1305_v18 = vsub.f32 %v178_v32, %v1266_v54  ;;  %v1713_v0 = vand.u32 4294901760, %v1274_v56 }
  0x21   : > { %363 = vmatpush.msra.mxu2 %v1148_v41  ;;  %415 = vmatpush.msra.mxu3 %v1132_v34  ;;  %v1714_v53 = vand.u32 4294901760, %v1277_v59  ;;  %v313_v32 = vsub.f32 %v1247_v39, %v1706_v62  ;;  %v1319_v48 = vsub.f32 %v176_v44, %v1284_v7  ;;  %v607_v46 = vsub.f32 %v1252_v43, %v1709_v2 }
  0x22   : > { %204 = vmatpush.msra.mxu0 %v1157_v45  ;;  %273 = vmatpush.msra.mxu1 %v272_v12  ;;  %v172_v12 = vld [vmem:[%s1697_s1 + $0xa8] sm:$0xff]  ;;  %v308_v44 = vand.u32 4294901760, %v307_v37  ;;  %v319_v62 = vsub.f32 %v1264_v49, %v1710_v38  ;;  %v1716_v35 = vand.u32 4294901760, %v1305_v18  ;;  %v166_v37 = vld [vmem:[%s1697_s1 + $0x78] sm:$0xff]  ;;  %v1724_v14 = vand.u32 4294901760, %v1082_v15 }
  0x23   : > { %366 = vmatpush.msra.mxu2 %v1173_v52  ;;  %417 = vmatpush.msra.mxu3 %v1157_v45  ;;  %v1321_v51 = vand.u32 4294901760, %v172_v12  ;;  %v314_v2 = vand.u32 4294901760, %v313_v32  ;;  %v1379_v23 = vand.u32 4294901760, %v166_v37  ;;  %v1726_v15 = vand.u32 4294901760, %v1086_v16 }
  0x24   : > { %206 = vmatpush.msra.mxu0 %v1169_v50  ;;  %279 = vmatpush.msra.mxu1 %v278_v36  ;;  %v296_v36 = vand.u32 4294901760, %v295_v47  ;;  %v302_v47 = vand.u32 4294901760, %v301_v61  ;;  %v168_v61 = vld [vmem:[%s1697_s1 + $0x88] sm:$0xff]  ;;  %v320_v32 = vand.u32 4294901760, %v319_v62  ;;  %v149_v62 = vld [vmem:[%s1366_s14] sm:$0xff] }
  0x25   : > { %369 = vmatpush.msra.mxu2 %v1188_v58  ;;  %419 = vmatpush.msra.mxu3 %v1169_v50  ;;  %v1356_v27 = vsub.f32 %v172_v12, %v1321_v51  ;;  %v1358_v24 = vand.u32 4294901760, %v168_v61  ;;  %v1408_v16 = vand.u32 4294901760, %v149_v62 }
  0x26   : > { %208 = vmatpush.msra.mxu0 %v1185_v57  ;;  %285 = vmatpush.msra.mxu1 %v284_v42  ;;  %v170_v42 = vld [vmem:[%s1697_s1 + $0x98] sm:$0xff] }
  0x27   : > { %372 = vmatpush.msra.mxu2 %v1206_v1  ;;  %421 = vmatpush.msra.mxu3 %v1185_v57  ;;  %v1340_v33 = vand.u32 4294901760, %v170_v42  ;;  %v1719_v12 = vand.u32 4294901760, %v1356_v27 }
  0x28   : > { %210 = vmatpush.msra.mxu0 %v1202_v63  ;;  %291 = vmatpush.msra.mxu1 %v290_v60  ;;  %v1329_v60 = vsub.f32 %v174_v55, %v1289_v6  ;;  %v325_v55 = vsub.f32 %v1274_v56, %v1713_v0  ;;  %v164_v0 = vld [vmem:[%s1697_s1 + $0x68] sm:$0xff] }
  0x29   : > { %375 = vmatpush.msra.mxu2 %v1226_v26  ;;  %423 = vmatpush.msra.mxu3 %v1202_v63  ;;  %v1377_v38 = vsub.f32 %v170_v42, %v1340_v33 }
  0x2a   : > { %212 = vmatpush.msra.mxu0 %v1222_v13  ;;  %297 = vmatpush.msra.mxu1 %v296_v36  ;;  %v613_v36 = vsub.f32 %v1277_v59, %v1714_v53  ;;  %v619_v53 = vsub.f32 %v1305_v18, %v1716_v35  ;;  %v1725_v35 = vand.u32 4294901760, %v1319_v48 }
  0x2b   : > { %378 = vmatpush.msra.mxu2 %v1247_v39  ;;  %425 = vmatpush.msra.mxu3 %v1222_v13 }
  0x2c   : > { %214 = vmatpush.msra.mxu0 %v1234_v30  ;;  %303 = vmatpush.msra.mxu1 %v302_v47  ;;  %v608_v47 = vand.u32 4294901760, %v607_v46  ;;  %v1384_v46 = vand.u32 4294901760, %v164_v0  ;;  %v625_v42 = vsub.f32 %v1319_v48, %v1725_v35  ;;  %v620_v35 = vand.u32 4294901760, %v619_v53 }
  0x2d   : > { %381 = vmatpush.msra.mxu2 %v1264_v49  ;;  %427 = vmatpush.msra.mxu3 %v1234_v30  ;;  %v1393_v30 = vsub.f32 %v168_v61, %v1358_v24  ;;  %v1406_v61 = vsub.f32 %v166_v37, %v1379_v23  ;;  %v637_v37 = vsub.f32 %v1356_v27, %v1719_v12 }
  0x2e   : > { %444 = vmatpush.msrb.mxu0 %v234_v22  ;;  %309 = vmatpush.msra.mxu1 %v308_v44  ;;  %v614_v22 = vand.u32 4294901760, %v613_v36  ;;  %v326_v44 = vand.u32 4294901760, %v325_v55  ;;  %v1727_v36 = vand.u32 4294901760, %v1329_v60  ;;  %v162_v55 = vld [vmem:[%s1697_s1 + $0x58] sm:$0xff]  ;;  %v626_v53 = vand.u32 4294901760, %v625_v42 }
  0x2f   : > { %384 = vmatpush.msra.mxu2 %v1274_v56  ;;  %609 = vmatpush.msrb.mxu3 %v608_v47  ;;  %v1728_v47 = vand.u32 4294901760, %v1094_v19  ;;  %v1423_v19 = vand.u32 4294901760, %v162_v55 }
  0x30   : > { %448 = vmatpush.msrb.mxu0 %v1724_v14  ;;  %315 = vmatpush.msra.mxu1 %v314_v2  ;;  %v631_v2 = vsub.f32 %v1329_v60, %v1727_v36  ;;  %v1718_v14 = vand.u32 4294901760, %v1377_v38  ;;  %v1720_v36 = vand.u32 4294901760, %v1393_v30 }
  0x31   : > { %556 = vmatpush.msrb.mxu2 %v1219_v8  ;;  %615 = vmatpush.msrb.mxu3 %v614_v22  ;;  %v1729_v22 = vand.u32 4294901760, %v1097_v20  ;;  %v1437_v20 = vsub.f32 %v149_v62, %v1408_v16  ;;  %v1450_v62 = vsub.f32 %v162_v55, %v1423_v19 }
  0x32   : > { %452 = vmatpush.msrb.mxu0 %v1726_v15  ;;  %321 = vmatpush.msra.mxu1 %v320_v32  ;;  %v1413_v15 = vsub.f32 %v164_v0, %v1384_v46  ;;  %v160_v32 = vld [vmem:[%s1697_s1 + $0x48] sm:$0xff]  ;;  %v632_v0 = vand.u32 4294901760, %v631_v2  ;;  %v643_v42 = vsub.f32 %v1377_v38, %v1718_v14  ;;  %v649_v14 = vsub.f32 %v1393_v30, %v1720_v36 }
  0x33   : > { %558 = vmatpush.msrb.mxu2 %v1236_v31  ;;  %621 = vmatpush.msrb.mxu3 %v620_v35  ;;  %v638_v35 = vand.u32 4294901760, %v637_v37 }
  0x34   : > { %456 = vmatpush.msrb.mxu0 %v1728_v47  ;;  %327 = vmatpush.msra.mxu1 %v326_v44  ;;  %v158_v44 = vld [vmem:[%s1697_s1 + $0x38] sm:$0xff]  ;;  %v1722_v47 = vand.u32 4294901760, %v1406_v61  ;;  %v1721_v2 = vand.u32 4294901760, %v1413_v15  ;;  %v644_v37 = vand.u32 4294901760, %v643_v42 }
  0x35   : > { %560 = vmatpush.msrb.mxu2 %v1266_v54  ;;  %627 = vmatpush.msrb.mxu3 %v626_v53  ;;  %v1452_v12 = vand.u32 4294901760, %v158_v44  ;;  %v150_v53 = vld [vmem:[%s1366_s14 + $0x8] sm:$0xff]  ;;  %v154_v42 = vld [vmem:[%s1697_s1 + $0x18] sm:$0xff] }
  0x36   : > { %460 = vmatpush.msrb.mxu0 %v1729_v22  ;;  %515 = vmatpush.msrb.mxu1 %v1050_v3  ;;  %v1439_v22 = vand.u32 4294901760, %v160_v32  ;;  %v1730_v3 = vand.u32 4294901760, %v1100_v21  ;;  %v156_v21 = vld [vmem:[%s1697_s1 + $0x28] sm:$0xff]  ;;  %v655_v55 = vsub.f32 %v1406_v61, %v1722_v47  ;;  %v1499_v47 = vand.u32 4294901760, %v154_v42 }
  0x37   : > { %562 = vmatpush.msrb.mxu2 %v1284_v7  ;;  %633 = vmatpush.msrb.mxu3 %v632_v0  ;;  %v1477_v0 = vand.u32 4294901760, %v156_v21 }
  0x38   : > { %464 = vmatpush.msrb.mxu0 %v1730_v3  ;;  %517 = vmatpush.msrb.mxu1 %v1052_v4  ;;  %v1731_v4 = vand.u32 4294901760, %v1117_v29  ;;  %v1466_v3 = vand.u32 4294901760, %v1437_v20  ;;  %v1469_v36 = vsub.f32 %v160_v32, %v1439_v22  ;;  %v1732_v29 = vand.u32 4294901760, %v1144_v40 }
  0x39   : > { %564 = vmatpush.msrb.mxu2 %v1289_v6  ;;  %639 = vmatpush.msrb.mxu3 %v638_v35  ;;  %v650_v32 = vand.u32 4294901760, %v649_v14  ;;  %v1485_v40 = vsub.f32 %v158_v44, %v1452_v12  ;;  %v656_v14 = vand.u32 4294901760, %v655_v55 }
  0x3a   : > { %468 = vmatpush.msrb.mxu0 %v1731_v4  ;;  %519 = vmatpush.msrb.mxu1 %v1054_v5  ;;  %v661_v5 = vsub.f32 %v1413_v15, %v1721_v2  ;;  %v666_v4 = vand.u32 4294901760, %v1450_v62  ;;  %v152_v2 = vld [vmem:[%s1697_s1 + $0x8] sm:$0xff]  ;;  %v218_v35 = vsub.f32 %v1437_v20, %v1466_v3 }
  0x3b   : > { %566 = vmatpush.msrb.mxu2 %v1321_v51  ;;  %645 = vmatpush.msrb.mxu3 %v644_v37  ;;  %v678_v55 = vand.u32 4294901760, %v1485_v40 }
  0x3c   : > { %472 = vmatpush.msrb.mxu0 %v1732_v29  ;;  %521 = vmatpush.msrb.mxu1 %v1065_v9  ;;  %v1487_v9 = vand.u32 4294901760, %v150_v53  ;;  %v1733_v29 = vand.u32 4294901760, %v1148_v41  ;;  %v1734_v41 = vand.u32 4294901760, %v1173_v52  ;;  %v667_v37 = vsub.f32 %v1450_v62, %v666_v4 }
  0x3d   : > { %568 = vmatpush.msrb.mxu2 %v1340_v33  ;;  %651 = vmatpush.msrb.mxu3 %v650_v32  ;;  %v1515_v52 = vand.u32 4294901760, %v152_v2 }
  0x3e   : > { %476 = vmatpush.msrb.mxu0 %v1733_v29  ;;  %523 = vmatpush.msrb.mxu1 %v1067_v10  ;;  %v662_v10 = vand.u32 4294901760, %v661_v5  ;;  %v1505_v29 = vsub.f32 %v156_v21, %v1477_v0  ;;  %v1513_v44 = vsub.f32 %v150_v53, %v1487_v9  ;;  %v1521_v21 = vand.u32 4294901760, %v218_v35 }
  0x3f   : > { %570 = vmatpush.msrb.mxu2 %v1358_v24  ;;  %657 = vmatpush.msrb.mxu3 %v656_v14  ;;  %v1736_v5 = vand.u32 4294901760, %v1469_v36  ;;  %v1737_v53 = vand.u32 4294901760, %v1206_v1  ;;  %v679_v14 = vsub.f32 %v1485_v40, %v678_v55  ;;  %v1738_v1 = vand.u32 4294901760, %v1226_v26 }
  0x40   : > { %480 = vmatpush.msrb.mxu0 %v1734_v41  ;;  %525 = vmatpush.msrb.mxu1 %v1069_v11  ;;  %v1735_v11 = vand.u32 4294901760, %v1188_v58  ;;  %v1527_v41 = vsub.f32 %v154_v42, %v1499_v47  ;;  %v684_v58 = vand.u32 4294901760, %v1505_v29  ;;  %v1538_v35 = vand.u32 4294901760, %v1513_v44 }
  0x41   : > { %572 = vmatpush.msrb.mxu2 %v1379_v23  ;;  %v673_v32 = vsub.f32 %v1469_v36, %v1736_v5  ;;  %663 = vmatpush.msrb.mxu3 %v662_v10  ;;  %v1541_v42 = vsub.f32 %v152_v2, %v1515_v52  ;;  %v1740_v5 = vand.u32 4294901760, %v1264_v49 }
  0x42   : > { %484 = vmatpush.msrb.mxu0 %v1735_v11  ;;  %527 = vmatpush.msrb.mxu1 %v1088_v17  ;;  %v668_v17 = vand.u32 4294901760, %v667_v37  ;;  %v690_v10 = vand.u32 4294901760, %v1527_v41  ;;  %v1739_v37 = vand.u32 4294901760, %v1247_v39  ;;  %v685_v2 = vsub.f32 %v1505_v29, %v684_v58 }
  0x43   : > { %574 = vmatpush.msrb.mxu2 %v1384_v46  ;;  %220 = vmatmul.f32.vlgmr.msra.gmra.mxu0 %v1521_v21  ;;  %v226_v26 = vsub.f32 %v1513_v44, %v1538_v35  ;;  %v696_v11 = vand.u32 4294901760, %v1541_v42  ;;  %v1741_v39 = vand.u32 4294901760, %v1274_v56 }
  0x44   : > { %488 = vmatpush.msrb.mxu0 %v1737_v53  ;;  %529 = vmatpush.msrb.mxu1 %v1107_v25  ;;  %v674_v25 = vand.u32 4294901760, %v673_v32  ;;  %v686_v32 = vand.u32 4294901760, %v685_v2  ;;  %v1743_v53 = vand.u32 4294901760, %v1277_v59 }
  0x45   : > { %576 = vmatpush.msrb.mxu2 %v1423_v19  ;;  %669 = vmatpush.msrb.mxu3 %v668_v17  ;;  %v1570_v49 = vand.u32 4294901760, %v226_v26 }
  0x46   : > { %492 = vmatpush.msrb.mxu0 %v1738_v1  ;;  %531 = vmatpush.msrb.mxu1 %v1114_v28  ;;  %v680_v28 = vand.u32 4294901760, %v679_v14 }
  0x47   : > { %578 = vmatpush.msrb.mxu2 %v1439_v22  ;;  %329 = vmatmul.f32.vlgmr.msra.gmra.mxu1 %v1408_v16 }
  0x48   : > { %496 = vmatpush.msrb.mxu0 %v1739_v37  ;;  %533 = vmatpush.msrb.mxu1 %v1132_v34  ;;  %v691_v34 = vsub.f32 %v1527_v41, %v690_v10 }
  0x49   : > { %580 = vmatpush.msrb.mxu2 %v1452_v12  ;;  %675 = vmatpush.msrb.mxu3 %v674_v25 }
  0x4a   : > { %500 = vmatpush.msrb.mxu0 %v1740_v5  ;;  %535 = vmatpush.msrb.mxu1 %v1157_v45  ;;  %v697_v45 = vsub.f32 %v1541_v42, %v696_v11  ;;  %v692_v56 = vand.u32 4294901760, %v691_v34 }
  0x4b   : > { %582 = vmatpush.msrb.mxu2 %v1477_v0  ;;  %681 = vmatpush.msrb.mxu3 %v680_v28 }
  0x4c   : > { %504 = vmatpush.msrb.mxu0 %v1741_v39  ;;  %537 = vmatpush.msrb.mxu1 %v1169_v50  ;;  %v698_v50 = vand.u32 4294901760, %v697_v45 }
  0x4d   : > { %387 = vmatmul.f32.vlgmr.msra.gmra.mxu2 %v1437_v20  ;;  %687 = vmatpush.msrb.mxu3 %v686_v32 }
  0x4e   : > { %711 = vmatpush.msra.mxu0 %v1252_v43  ;;  %539 = vmatpush.msrb.mxu1 %v1185_v57  ;;  %v1742_v57 = vand.u32 4294901760, %v1252_v43  ;;  %v1745_v43 = vand.u32 4294901760, %v1305_v18 }
  0x4f   : > { %584 = vmatpush.msrb.mxu2 %v1499_v47  ;;  %228 = vmatmul.f32.gmra.mxu0 %v1570_v49 }
  0x50   : > { %714 = vmatpush.msra.mxu0 %v1277_v59  ;;  %431 = vmatmul.f32.vlgmr.msra.gmra.mxu3 %v1466_v3 }
  0x51   : > { %541 = vmatpush.msrb.mxu1 %v1202_v63  ;;  %586 = vmatpush.msrb.mxu2 %v1515_v52  ;;  %v1744_v63 = vld [vmem:[#allocation2_spill] sm:$0xff] }
  0x52   : > { %693 = vmatpush.msrb.mxu3 %v692_v56  ;;  %717 = vmatpush.msra.mxu0 %v1305_v18  ;;  %v1748_v18 = vand.u32 4294901760, %v1356_v27 }
  0x53   : > { %816 = vmatpush.msra.mxu2 %v1742_v57  ;;  %333 = vmatmul.f32.gmra.mxu1 %v1487_v9 }
  0x54   : > { %543 = vmatpush.msrb.mxu1 %v1222_v13  ;;  %699 = vmatpush.msrb.mxu3 %v698_v50  ;;  %v1746_v13 = vand.u32 4294901760, %v1319_v48 }
  0x55   : > { %720 = vmatpush.msra.mxu0 %v1319_v48  ;;  %820 = vmatpush.msra.mxu2 %v1743_v53  ;;  %v1750_v48 = vand.u32 4294901760, %v1393_v30 }
  0x56   : > { %887 = vmatpush.msra.mxu3 %v1219_v8  ;;  %545 = vmatpush.msrb.mxu1 %v1744_v63 }
  0x57   : > { %723 = vmatpush.msra.mxu0 %v1329_v60  ;;  %824 = vmatpush.msra.mxu2 %v1745_v43 }
  0x58   : > { %769 = vmatpush.msra.mxu1 %v1219_v8  ;;  %889 = vmatpush.msra.mxu3 %v1236_v31  ;;  %v1747_v8 = vand.u32 4294901760, %v1329_v60 }
  0x59   : > { %392 = vmatmul.f32.gmra.mxu2 %v1513_v44  ;;  %726 = vmatpush.msra.mxu0 %v1356_v27  ;;  %v1751_v27 = vand.u32 4294901760, %v1406_v61 }
  0x5a   : > { %771 = vmatpush.msra.mxu1 %v1236_v31  ;;  %828 = vmatpush.msra.mxu2 %v1746_v13  ;;  %v1749_v31 = vand.u32 4294901760, %v1377_v38 }
  0x5b   : > { %891 = vmatpush.msra.mxu3 %v1266_v54  ;;  %506 = vmatmul.f32.vlgmr.msrb.gmra.mxu0 %v1408_v16 }
  0x5c   : > { %437 = vmatmul.f32.gmra.mxu3 %v1538_v35  ;;  %729 = vmatpush.msra.mxu0 %v1377_v38 }
  0x5d   : > { %773 = vmatpush.msra.mxu1 %v1266_v54  ;;  %832 = vmatpush.msra.mxu2 %v1747_v8 }
  0x5e   : > { %893 = vmatpush.msra.mxu3 %v1284_v7  ;;  %547 = vmatmul.f32.vlgmr.msrb.gmra.mxu1 %v1408_v16 }
  0x5f   : > { %732 = vmatpush.msra.mxu0 %v1393_v30  ;;  %775 = vmatpush.msra.mxu1 %v1284_v7 }
  0x60   : > { %836 = vmatpush.msra.mxu2 %v1748_v18  ;;  %895 = vmatpush.msra.mxu3 %v1289_v6 }
  0x61   : > { %735 = vmatpush.msra.mxu0 %v1406_v61  ;;  %777 = vmatpush.msra.mxu1 %v1289_v6 }
  0x62   : > { %840 = vmatpush.msra.mxu2 %v1749_v31  ;;  %897 = vmatpush.msra.mxu3 %v1321_v51 }
  0x63   : > { %738 = vmatpush.msra.mxu0 %v1413_v15  ;;  %779 = vmatpush.msra.mxu1 %v1321_v51  ;;  %v1752_v51 = vand.u32 4294901760, %v1413_v15 }
  0x64   : > { %844 = vmatpush.msra.mxu2 %v1750_v48  ;;  %899 = vmatpush.msra.mxu3 %v1340_v33 }
  0x65   : > { %510 = vmatmul.f32.gmra.mxu0 %v1487_v9  ;;  %592 = vmatmul.f32.vlgmr.msrb.gmra.mxu2 %v1521_v21 }
  0x66   : > { %701 = vmatmul.f32.vlgmr.msrb.gmra.mxu3 %v1408_v16  ;;  %741 = vmatpush.msra.mxu0 %v1450_v62 }
  0x67   : > { %781 = vmatpush.msra.mxu1 %v1340_v33  ;;  %848 = vmatpush.msra.mxu2 %v1751_v27 }
  0x68   : > { %901 = vmatpush.msra.mxu3 %v1358_v24  ;;  %551 = vmatmul.f32.gmra.mxu1 %v1487_v9 }
  0x69   : > { %744 = vmatpush.msra.mxu0 %v1469_v36  ;;  %783 = vmatpush.msra.mxu1 %v1358_v24  ;;  %v1753_v24 = vand.u32 4294901760, %v1469_v36 }
  0x6a   : > { %852 = vmatpush.msra.mxu2 %v1752_v51  ;;  %903 = vmatpush.msra.mxu3 %v1379_v23 }
  0x6b   : > { %747 = vmatpush.msra.mxu0 %v1485_v40  ;;  %785 = vmatpush.msra.mxu1 %v1379_v23 }
  0x6c   : > { %856 = vmatpush.msra.mxu2 %v666_v4  ;;  %905 = vmatpush.msra.mxu3 %v1384_v46 }
  0x6d   : > { %750 = vmatpush.msra.mxu0 %v1505_v29  ;;  %787 = vmatpush.msra.mxu1 %v1384_v46 }
  0x6e   : > { %860 = vmatpush.msra.mxu2 %v1753_v24  ;;  %907 = vmatpush.msra.mxu3 %v1423_v19 }
  0x6f   : > { %600 = vmatmul.f32.gmra.mxu2 %v1570_v49  ;;  %705 = vmatmul.f32.gmra.mxu3 %v1487_v9 }
  0x70   : > { %753 = vmatpush.msra.mxu0 %v1527_v41  ;;  %789 = vmatpush.msra.mxu1 %v1423_v19 }
  0x71   : > { %864 = vmatpush.msra.mxu2 %v678_v55  ;;  %909 = vmatpush.msra.mxu3 %v1439_v22 }
  0x72   : > { %756 = vmatpush.msra.mxu0 %v1541_v42  ;;  %791 = vmatpush.msra.mxu1 %v1439_v22 }
  0x73   : > { %868 = vmatpush.msra.mxu2 %v684_v58  ;;  %911 = vmatpush.msra.mxu3 %v1452_v12 }
  0x74   : > { %759 = vmatmul.f32.vlgmr.msra.gmra.mxu0 %v1437_v20  ;;  %793 = vmatpush.msra.mxu1 %v1452_v12 }
  0x75   : > { %872 = vmatpush.msra.mxu2 %v690_v10  ;;  %913 = vmatpush.msra.mxu3 %v1477_v0 }
  0x76   : > { %795 = vmatpush.msra.mxu1 %v1477_v0 }
  0x77   : > { %876 = vmatpush.msra.mxu2 %v696_v11  ;;  %915 = vmatpush.msra.mxu3 %v1499_v47 }
  0x78   : > { %878 = vmatmul.f32.vlgmr.msra.gmra.mxu2 %v1408_v16  ;;  %797 = vmatpush.msra.mxu1 %v1499_v47 }
  0x79   : > { %917 = vmatpush.msra.mxu3 %v1515_v52 }
  0x7a   : > { %919 = vmatmul.f32.vlgmr.msra.gmra.mxu3 %v1408_v16  ;;  %799 = vmatpush.msra.mxu1 %v1515_v52 }
  0x7b   : > { %803 = vmatmul.f32.vlgmr.msra.gmra.mxu1 %v1466_v3 }
  0x7c   : > { %764 = vmatmul.f32.gmra.mxu0 %v1513_v44 }
  0x80   : > { %882 = vmatmul.f32.gmra.mxu2 %v1487_v9 }
  0x82   : > { %923 = vmatmul.f32.gmra.mxu3 %v1487_v9 }
  0x83   : > { %809 = vmatmul.f32.gmra.mxu1 %v1538_v35 }
  0xc0   : > { %v221_v23 = vpop.f32.mrf.mxu0 }
  0xc4   : > { %v330_v33 = vpop.f32.mrf.mxu1 }
  0xc5   : > { %v331_v30 = vadd.f32 %v330_v33, %v221_v23 }
  0xcc   : > { %v229_v38 = vpop.f32.mrf.mxu0 }
  0xd0   : > { %v388_v54 = vpop.f32.mrf.mxu2  ;;  %v334_v59 = vpop.f32.mrf.mxu1 }
  0xd1   : > { %v389_v7 = vadd.f32 %v388_v54, %v331_v30  ;;  %v335_v46 = vadd.f32 %v334_v59, %v229_v38 }
  0xd3   : > { %v432_v6 = vpop.f32.mrf.mxu3 }
  0xd4   : > { %v433_v60 = vadd.f32 %v432_v6, %v389_v7 }
  0xd8   : > { %v507_v12 = vpop.f32.mrf.mxu0 }
  0xd9   : > { %v508_v61 = vadd.f32 %v507_v12, %v433_v60 }
  0xdb   : > { %v548_v16 = vpop.f32.mrf.mxu1 }
  0xdc   : > { %v549_v15 = vadd.f32 %v548_v16, %v508_v61  ;;  %v393_v36 = vpop.f32.mrf.mxu2 }
  0xdd   : > { %v394_v19 = vadd.f32 %v393_v36, %v335_v46 }
  0xde   : > { %927 = vst [vmem:[%s1687_s30] sm:$0xff] %v549_v15 }
  0xdf   : > { %v438_v47 = vpop.f32.mrf.mxu3 }
  0xe0   : > { %v439_v20 = vadd.f32 %v438_v47, %v394_v19 }
  0xe2   : > { %v511_v22 = vpop.f32.mrf.mxu0 }
  0xe3   : > { %v512_v62 = vadd.f32 %v511_v22, %v439_v20 }
  0xe5   : > { %v552_v3 = vpop.f32.mrf.mxu1 }
  0xe6   : > { %v553_v0 = vadd.f32 %v552_v3, %v512_v62 }
  0xe8   : > { %929 = vst [vmem:[%s1687_s30 + $0x10] sm:$0xff] %v553_v0  ;;  %v593_v4 = vpop.f32.mrf.mxu2 }
  0xe9   : > { %v702_v40 = vpop.f32.mrf.mxu3 }
  0xea   : > { %v703_v29 = vadd.f32 %v702_v40, %v593_v4 }
  0xf1   : > { %v760_v9 = vpop.f32.mrf.mxu0 }
  0xf2   : > { %v601_v44 = vpop.f32.mrf.mxu2  ;;  %v706_v55 = vpop.f32.mrf.mxu3  ;;  %v761_v52 = vadd.f32 %v760_v9, %v703_v29 }
  0xf3   : > { %v707_v35 = vadd.f32 %v706_v55, %v601_v44 }
  0xf8   : > { %v804_v21 = vpop.f32.mrf.mxu1 }
  0xf9   : > { %v805_v41 = vadd.f32 %v804_v21, %v761_v52  ;;  %v765_v17 = vpop.f32.mrf.mxu0 }
  0xfa   : > { %v766_v25 = vadd.f32 %v765_v17, %v707_v35 }
  0xfb   : > { %v879_v58 = vpop.f32.mrf.mxu2 }
  0xfc   : > { %v880_v14 = vadd.f32 %v879_v58, %v805_v41 }
  0xfd   : > { %v920_v42 = vpop.f32.mrf.mxu3 }
  0xfe   : > { %v921_v1 = vadd.f32 %v920_v42, %v880_v14 }
 0x100   : > { %928 = vst [vmem:[%s1687_s30 + $0x8] sm:$0xff] %v921_v1  ;;  %v810_v10 = vpop.f32.mrf.mxu1 }
 0x101   : > { %v811_v37 = vadd.f32 %v810_v10, %v766_v25 }
 0x103   : > { %v883_v2 = vpop.f32.mrf.mxu2 }
 0x104   : > { %v884_v28 = vadd.f32 %v883_v2, %v811_v37 }
 0x105   : > { %v924_v26 = vpop.f32.mrf.mxu3 }
 0x106   : > { %v925_v11 = vadd.f32 %v924_v26, %v884_v28 }
 0x108   : > { %930 = vst [vmem:[%s1687_s30 + $0x18] sm:$0xff] %v925_v11 }
 0x109 PF: > { %s12_s9 = sadd.s32 1, %s1016_s9  }
 0x10a   : > { %p9_p4 = scmp.ge.s32.totalorder %s12_s9, 4  }
 0x10c   :  { %11 = sbr.rel (!%p9_p4) target bundleno = 1 (0x1), region = 58 }

</bundles_post_ra>
